<compile_context>
chip_gen: v7x
topology: tpu7x:2x2x1
jax: 0.10.0
libtpu: 0.0.40
codegen_flags: <defaults>
</compile_context>

<pallas_src>
import jax
import jax.numpy as jnp
from jax.experimental import pallas as pl
from jax.experimental.pallas import tpu as pltpu


# --------------------------------------------------------------------------- #
# Kernels
# --------------------------------------------------------------------------- #
def _pool_direct_kernel(x_ref, p_ref, o_ref):
    # out = x @ P ; the MXU accumulates in f32 (no explicit upcast of x).
    o_ref[...] = jnp.dot(
        x_ref[...], p_ref[...], preferred_element_type=jnp.float32
    ).astype(o_ref.dtype)


def _pool_acc_kernel(x_ref, p_ref, o_ref, acc_ref):
    # out = sum_k x_k @ P, accumulated in an f32 VMEM scratch across grid axis 2.
    @pl.when(pl.program_id(2) == 0)
    def _():
        acc_ref[...] = jnp.zeros_like(acc_ref)

    acc_ref[...] += jnp.dot(
        x_ref[...], p_ref[...], preferred_element_type=jnp.float32
    )
    o_ref[...] = acc_ref[...].astype(o_ref.dtype)


# --------------------------------------------------------------------------- #
# Constant pooling matrices (values are 0 / 0.25, exact in bf16)
# --------------------------------------------------------------------------- #
def _pair_pooling_matrix(w, wo, dtype):
    """(2*w, wo): flat input row is [row0 (w) | row1 (w)];
    out[:, u] = 0.25*(row0[2u] + row0[2u+1] + row1[2u] + row1[2u+1]).
    An odd trailing input column (w odd) simply has no tap."""
    q = jnp.arange(2 * w)
    col = jnp.where(q < w, q, q - w) // 2
    taps = col[:, None] == jnp.arange(wo)[None, :]
    return (taps.astype(jnp.float32) * 0.25).astype(dtype)


def _half_pooling_matrix(tn, dtype):
    """(2*tn, tn): out[:, u] += 0.25*(x[2u] + x[2u+1]) for one row half."""
    q = jnp.arange(2 * tn)
    taps = (q[:, None] // 2) == jnp.arange(tn)[None, :]
    return (taps.astype(jnp.float32) * 0.25).astype(dtype)


# --------------------------------------------------------------------------- #
# Tiling heuristics
# --------------------------------------------------------------------------- #
def _choose_fold(M, Wo):
    """Fold factor g (a divisor of M): g consecutive row-pairs share one flat
    row so the output row (g*Wo lanes) is lane dense.  Prefer the smallest g
    with g*Wo a multiple of 128; otherwise the divisor (g*Wo <= 256) that
    minimizes lane padding.  Returns 1 when Wo is already wide."""
    if Wo % 128 == 0 or Wo >= 256:
        return 1

    def pad_frac(w):
        pad = -w % 128
        return pad / float(w + pad)

    best_g, best_frac = 1, pad_frac(Wo)
    g = 2
    while g <= M and g * Wo <= 512:
        if M % g == 0:
            if (g * Wo) % 128 == 0:
                return g                      # smallest exact lane-dense fold
            if g * Wo <= 256:
                frac = pad_frac(g * Wo)
                if frac < best_frac - 1e-9:
                    best_g, best_frac = g, frac
        g += 1
    return best_g


def _choose_block_rows(Mf, in_row_bytes, out_row_bytes, acc_row_bytes, p_block_bytes):
    """Rows per grid step: target ~8 MiB input blocks, keep the double-buffered
    working set under ~40 MiB (fits v7x's 64 MiB physical VMEM)."""
    target = (8 * 1024 * 1024) // max(in_row_bytes, 1)
    budget = 40 * 1024 * 1024 - 2 * p_block_bytes
    per_row = 2 * in_row_bytes + 2 * out_row_bytes + acc_row_bytes
    bm = max(8, min(target, budget // max(per_row, 1)))
    if bm >= Mf:
        return Mf                              # full dim is always legal
    return min(max(16, bm - bm % 16), Mf)      # sublane-aligned (f32 & bf16)


# --------------------------------------------------------------------------- #
# Wrapper
# --------------------------------------------------------------------------- #
@jax.jit
def snn_pooling(x):
    """AvgPool2d((2, 2), stride=(2, 2)) on an NCHW input (== SNNPooling.forward)."""
    N, C, H, W = x.shape
    Ho, Wo = H // 2, W // 2
    if Ho == 0 or Wo == 0:
        return jnp.zeros((N, C, Ho, Wo), x.dtype)
    if H % 2:
        # TODO(synk): odd H forces a real HBM copy here; a 3-D BlockSpec over
        # (N*C, H, W) skipping the leftover row would avoid it.
        x = x[:, :, : 2 * Ho, :]
    # Odd W needs no crop: the trailing column simply has no tap in P.

    dtype = x.dtype
    isz = jnp.dtype(dtype).itemsize
    M = N * C * Ho                  # number of vertical row pairs
    L = 2 * W                       # flat pair-row: [even image row | odd image row]

    wide = (Wo >= 256) and (Wo % 128 == 0)
    g = 1 if wide else _choose_fold(M, Wo)
    Mf, Lf, Wf = M // g, g * L, g * Wo
    xr = x.reshape(Mf, Lf)          # free, contiguous reshape (no transpose)

    if wide:
        # Column-tiled + K-sliced: each step contracts the 2*TN input lanes
        # (one slice from the even row, one from the odd row) that feed a
        # lane-dense TN-wide output tile.  ~2 flops/byte -> HBM-bound on all
        # generations, and P stays a tiny constant tile.
        TN, Kt = 128, 2
        Jt = Wo // TN
        CK = 2 * TN
        P = _half_pooling_matrix(TN, dtype)                    # (256, 128)
        x_index = lambda i, j, k: (i, k * Jt + j)
        p_index = lambda i, j, k: (0, 0)
        o_index = lambda i, j, k: (i, j)
        kernel, acc_rows, col_outer = _pool_acc_kernel, TN * 4, False
    elif 2 * Lf * Wf * isz <= 24 * 1024 * 1024:
        # One matmul against a block-diagonal pooling matrix over the folded
        # flat row (g row-pairs per row => lane-dense g*Wo output columns).
        CK, TN, Jt, Kt = Lf, Wf, 1, 1
        base = _pair_pooling_matrix(W, Wo, dtype)              # (2W, Wo)
        P = base if g == 1 else jnp.kron(jnp.eye(g, dtype=dtype), base)
        x_index = lambda i, j, k: (i, 0)
        p_index = lambda i, j, k: (0, 0)
        o_index = lambda i, j, k: (i, j)
        kernel, acc_rows, col_outer = _pool_direct_kernel, 0, False
    else:
        # Very wide Wo that is not a multiple of 128: tile P / output columns so
        # the P block fits VMEM.  Column tile is the OUTER grid axis so the big
        # dense P is only read once; the input row block is re-read per tile.
        CK, Kt = Lf, 1
        TN = max(128, min(512,
                          ((12 * 1024 * 1024) // max(2 * Lf * isz, 1)) // 128 * 128))
        Jt = pl.cdiv(Wf, TN)
        P = _pair_pooling_matrix(W, Wo, dtype)                 # dense (Lf, Wf), g == 1
        x_index = lambda j, i, k: (i, 0)
        p_index = lambda j, i, k: (0, j)
        o_index = lambda j, i, k: (i, j)
        kernel, acc_rows, col_outer = _pool_direct_kernel, 0, True

    BM = _choose_block_rows(Mf, CK * isz, TN * isz, acc_rows, CK * TN * isz)
    Gi = pl.cdiv(Mf, BM)
    grid = (Jt, Gi, Kt) if col_outer else (Gi, Jt, Kt)
    scratch = [pltpu.VMEM((BM, TN), jnp.float32)] if acc_rows else []

    x_reads = Jt if col_outer else 1
    cost = pl.CostEstimate(
        flops=int(2 * Mf * CK * TN * Jt * Kt),
        transcendentals=0,
        bytes_accessed=int(x_reads * Mf * Lf * isz + Mf * Wf * isz + P.size * isz),
    )

    out = pl.pallas_call(
        kernel,
        out_shape=jax.ShapeDtypeStruct((Mf, Wf), dtype),
        grid=grid,
        in_specs=[
            pl.BlockSpec((BM, CK), x_index),
            pl.BlockSpec((CK, TN), p_index),
        ],
        out_specs=pl.BlockSpec((BM, TN), o_index),
        scratch_shapes=scratch,
        compiler_params=pltpu.CompilerParams(
            dimension_semantics=("parallel", "parallel", "arbitrary"),
            vmem_limit_bytes=48 * 1024 * 1024,
        ),
        cost_estimate=cost,
    )(xr, P)

    return out.reshape(N, C, Ho, Wo)


if __name__ == "__main__":
    key = jax.random.PRNGKey(0)
    # SNNPooling has no parameters; only an input tensor is needed.
    x = jax.random.normal(key, (2, 4, 16, 16), dtype=jnp.float32)

    y = jax.block_until_ready(snn_pooling(x))

    # Reference: plain JAX 2x2 average pooling.
    N, C, H, W = x.shape
    y_ref = x.reshape(N, C, H // 2, 2, W // 2, 2).mean(axis=(3, 5))

    assert y.shape == (N, C, H // 2, W // 2), y.shape
    assert jnp.allclose(y, y_ref, atol=1e-5, rtol=1e-5), float(jnp.abs(y - y_ref).max())

    print("KERNEL_OK")
</pallas_src>

<mosaic_0001>
module attributes {stable_mosaic.version = 11 : i64} {
  func.func @_pool_direct_kernel(%arg0: i32, %arg1: i32, %arg2: i32, %arg3: memref<4x512xf32, #tpu.memory_space<vmem>>, %arg4: memref<512x128xf32, #tpu.memory_space<vmem>>, %arg5: memref<4x128xf32, #tpu.memory_space<vmem>>) attributes {dimension_semantics = [#tpu.dimension_semantics<parallel>, #tpu.dimension_semantics<parallel>, #tpu.dimension_semantics<arbitrary>], iteration_bounds = array<i64: 1, 1, 1>, scalar_prefetch = 0 : i64, scratch_operands = 0 : i64, tpu.core_type = #tpu.core_type<tc>, window_params = [{transform_indices = @transform_0, window_bounds = array<i64: 4, 512>}, {pipeline_mode = #tpu.pipeline_mode<synchronous>, transform_indices = @transform_1, window_bounds = array<i64: 512, 128>}, {transform_indices = @transform_2, window_bounds = array<i64: 4, 128>}]} {
    %c0 = arith.constant 0 : index
    %c0_0 = arith.constant 0 : index
    %0 = vector.load %arg3[%c0, %c0_0] : memref<4x512xf32, #tpu.memory_space<vmem>>, vector<4x512xf32>
    %c0_1 = arith.constant 0 : index
    %c0_2 = arith.constant 0 : index
    %1 = vector.load %arg4[%c0_1, %c0_2] : memref<512x128xf32, #tpu.memory_space<vmem>>, vector<512x128xf32>
    %cst = arith.constant dense<0.000000e+00> : vector<4x128xf32>
    %2 = tpu.matmul %0, %1, %cst {dimension_numbers = #tpu.dot_dimension_numbers<[1], [0], [0], [1], [0, 0, 1, 1], [], []>} : vector<4x512xf32>, vector<512x128xf32>, vector<4x128xf32> -> vector<4x128xf32>
    %c0_3 = arith.constant 0 : index
    %c0_4 = arith.constant 0 : index
    %3 = vector.load %arg5[%c0_3, %c0_4] : memref<4x128xf32, #tpu.memory_space<vmem>>, vector<4x128xf32>
    tpu.vector_store %arg5[%c0_3, %c0_4], %2 {strides = array<i32>} : memref<4x128xf32, #tpu.memory_space<vmem>>, vector<4x128xf32>,
    return
  }
  func.func @transform_0(%arg0: i32, %arg1: i32, %arg2: i32) -> (i32, i32) {
    %c0_i32 = arith.constant 0 : i32
    %c0_i32_0 = arith.constant 0 : i32
    return %arg0, %c0_i32 : i32, i32
  }
  func.func @transform_1(%arg0: i32, %arg1: i32, %arg2: i32) -> (i32, i32) {
    %c0_i32 = arith.constant 0 : i32
    %c0_i32_0 = arith.constant 0 : i32
    %c0_i32_1 = arith.constant 0 : i32
    return %c0_i32, %c0_i32_0 : i32, i32
  }
  func.func @transform_2(%arg0: i32, %arg1: i32, %arg2: i32) -> (i32, i32) {
    %c0_i32 = arith.constant 0 : i32
    return %arg0, %arg1 : i32, i32
  }
}

</mosaic_0001>

<bundles_post_ra>
// kernel: snn_pooling.1
= control target key start
LH: loop header
LB: loop body
LE: loop exit
PB: predicated region body
PF: predicated region fallthrough
CT: control target
= control target key end

     0   :  { %s580_s1 = inlined_call_operand.vmem [shape: f32[512,128], index: 1, kind: input, shape index: {}]   ;;  %s581_s0 = inlined_call_operand.vmem [shape: f32[4,512], index: 0, kind: input, shape index: {}]   ;;  %s582_s2 = inlined_call_operand.vmem [shape: f32[4,128], index: 2, kind: output, shape index: {}]  }
   0x1   :  { %v29_v0 = vld [vmem:[%s580_s1 + $0x80] sm:$0xff]  ;;  %v30_v1 = vld [vmem:[%s580_s1 + $0x88] sm:$0xff]  ;;  %v31_v11 = vld [vmem:[%s580_s1 + $0x90] sm:$0xff] }
   0x2   :  { %v61_v2 = vld [vmem:[%s580_s1 + $0x180] sm:$0xff]  ;;  %v298_v3 = vpack.c.bf16 %v30_v1, %v29_v0  ;;  %v62_v4 = vld [vmem:[%s580_s1 + $0x188] sm:$0xff]  ;;  %v32_v13 = vld [vmem:[%s580_s1 + $0x98] sm:$0xff] }
   0x3   :  { %v13_v5 = vld [vmem:[%s580_s1] sm:$0xff]  ;;  %v14_v6 = vld [vmem:[%s580_s1 + $0x8] sm:$0xff]  ;;  %v330_v7 = vpack.c.bf16 %v62_v4, %v61_v2  ;;  %v63_v14 = vld [vmem:[%s580_s1 + $0x190] sm:$0xff]  ;;  %v302_v16 = vpack.c.bf16 %v32_v13, %v31_v11 }
   0x4   :  { %v300_v8 = vpack.c.bf16 %v14_v6, %v13_v5  ;;  %v45_v9 = vld [vmem:[%s580_s1 + $0x100] sm:$0xff]  ;;  %v46_v10 = vld [vmem:[%s580_s1 + $0x108] sm:$0xff]  ;;  %299 = vmatprep.subr.bf16.mxu0 %v298_v3  ;;  %v64_v15 = vld [vmem:[%s580_s1 + $0x198] sm:$0xff] }
   0x5   :  { %v332_v12 = vpack.c.bf16 %v46_v10, %v45_v9  ;;  %331 = vmatprep.subr.bf16.mxu1 %v330_v7  ;;  %v334_v17 = vpack.c.bf16 %v64_v15, %v63_v14  ;;  %v15_v18 = vld [vmem:[%s580_s1 + $0x10] sm:$0xff]  ;;  %v16_v19 = vld [vmem:[%s580_s1 + $0x18] sm:$0xff]  ;;  %v33_v23 = vld [vmem:[%s580_s1 + $0xa0] sm:$0xff] }
   0x6   :  { %301 = vmatpush3.bf16.msra.mxu0 %v300_v8  ;;  %v47_v20 = vld [vmem:[%s580_s1 + $0x110] sm:$0xff]  ;;  %v304_v21 = vpack.c.bf16 %v16_v19, %v15_v18  ;;  %v48_v22 = vld [vmem:[%s580_s1 + $0x118] sm:$0xff]  ;;  %v34_v24 = vld [vmem:[%s580_s1 + $0xa8] sm:$0xff] }
   0x7   :  { %333 = vmatpush3.bf16.msra.mxu1 %v332_v12  ;;  %303 = vmatprep.subr.bf16.mxu0 %v302_v16  ;;  %v336_v25 = vpack.c.bf16 %v48_v22, %v47_v20  ;;  %v306_v26 = vpack.c.bf16 %v34_v24, %v33_v23  ;;  %v65_v27 = vld [vmem:[%s580_s1 + $0x1a0] sm:$0xff]  ;;  %v66_v28 = vld [vmem:[%s580_s1 + $0x1a8] sm:$0xff]  ;;  %v35_v35 = vld [vmem:[%s580_s1 + $0xb0] sm:$0xff] }
   0x8   :  { %335 = vmatprep.subr.bf16.mxu1 %v334_v17  ;;  %v17_v29 = vld [vmem:[%s580_s1 + $0x20] sm:$0xff]  ;;  %v338_v30 = vpack.c.bf16 %v66_v28, %v65_v27  ;;  %v18_v31 = vld [vmem:[%s580_s1 + $0x28] sm:$0xff]  ;;  %v36_v36 = vld [vmem:[%s580_s1 + $0xb8] sm:$0xff] }
   0x9   :  { %v49_v32 = vld [vmem:[%s580_s1 + $0x120] sm:$0xff]  ;;  %v50_v33 = vld [vmem:[%s580_s1 + $0x128] sm:$0xff]  ;;  %v308_v34 = vpack.c.bf16 %v18_v31, %v17_v29  ;;  %v67_v37 = vld [vmem:[%s580_s1 + $0x1b0] sm:$0xff]  ;;  %v310_v39 = vpack.c.bf16 %v36_v36, %v35_v35 }
   0xa   :  { %305 = vmatpush3.bf16.msra.mxu0 %v304_v21  ;;  %v340_v38 = vpack.c.bf16 %v50_v33, %v49_v32  ;;  %v68_v40 = vld [vmem:[%s580_s1 + $0x1b8] sm:$0xff]  ;;  %v19_v41 = vld [vmem:[%s580_s1 + $0x30] sm:$0xff]  ;;  %v37_v46 = vld [vmem:[%s580_s1 + $0xc0] sm:$0xff] }
   0xb   :  { %337 = vmatpush3.bf16.msra.mxu1 %v336_v25  ;;  %307 = vmatprep.subr.bf16.mxu0 %v306_v26  ;;  %v20_v42 = vld [vmem:[%s580_s1 + $0x38] sm:$0xff]  ;;  %v342_v43 = vpack.c.bf16 %v68_v40, %v67_v37  ;;  %v51_v44 = vld [vmem:[%s580_s1 + $0x130] sm:$0xff]  ;;  %v38_v47 = vld [vmem:[%s580_s1 + $0xc8] sm:$0xff] }
   0xc   :  { %339 = vmatprep.subr.bf16.mxu1 %v338_v30  ;;  %v52_v45 = vld [vmem:[%s580_s1 + $0x138] sm:$0xff]  ;;  %v69_v48 = vld [vmem:[%s580_s1 + $0x1c0] sm:$0xff]  ;;  %v70_v49 = vld [vmem:[%s580_s1 + $0x1c8] sm:$0xff]  ;;  %v312_v50 = vpack.c.bf16 %v20_v42, %v19_v41  ;;  %v314_v52 = vpack.c.bf16 %v38_v47, %v37_v46 }
   0xd   :  { %v344_v51 = vpack.c.bf16 %v52_v45, %v51_v44  ;;  %v21_v53 = vld [vmem:[%s580_s1 + $0x40] sm:$0xff]  ;;  %v22_v54 = vld [vmem:[%s580_s1 + $0x48] sm:$0xff]  ;;  %v346_v56 = vpack.c.bf16 %v70_v49, %v69_v48  ;;  %v39_v58 = vld [vmem:[%s580_s1 + $0xd0] sm:$0xff] }
   0xe   :  { %309 = vmatpush3.bf16.msra.mxu0 %v308_v34  ;;  %v53_v55 = vld [vmem:[%s580_s1 + $0x140] sm:$0xff]  ;;  %v54_v57 = vld [vmem:[%s580_s1 + $0x148] sm:$0xff]  ;;  %v40_v59 = vld [vmem:[%s580_s1 + $0xd8] sm:$0xff]  ;;  %v316_v62 = vpack.c.bf16 %v22_v54, %v21_v53 }
   0xf   :  { %341 = vmatpush3.bf16.msra.mxu1 %v340_v38  ;;  %311 = vmatprep.subr.bf16.mxu0 %v310_v39  ;;  %v71_v60 = vld [vmem:[%s580_s1 + $0x1d0] sm:$0xff]  ;;  %v72_v61 = vld [vmem:[%s580_s1 + $0x1d8] sm:$0xff]  ;;  %v348_v63 = vpack.c.bf16 %v54_v57, %v53_v55  ;;  %v318_v0 = vpack.c.bf16 %v40_v59, %v39_v58  ;;  %v41_v6 = vld [vmem:[%s580_s1 + $0xe0] sm:$0xff] }
  0x10   :  { %343 = vmatprep.subr.bf16.mxu1 %v342_v43  ;;  %v23_v1 = vld [vmem:[%s580_s1 + $0x50] sm:$0xff]  ;;  %v24_v2 = vld [vmem:[%s580_s1 + $0x58] sm:$0xff]  ;;  %v350_v4 = vpack.c.bf16 %v72_v61, %v71_v60  ;;  %v42_v7 = vld [vmem:[%s580_s1 + $0xe8] sm:$0xff] }
  0x11   :  { %v55_v3 = vld [vmem:[%s580_s1 + $0x150] sm:$0xff]  ;;  %v56_v5 = vld [vmem:[%s580_s1 + $0x158] sm:$0xff]  ;;  %v73_v8 = vld [vmem:[%s580_s1 + $0x1e0] sm:$0xff]  ;;  %v320_v10 = vpack.c.bf16 %v24_v2, %v23_v1  ;;  %v322_v14 = vpack.c.bf16 %v42_v7, %v41_v6 }
  0x12   :  { %313 = vmatpush3.bf16.msra.mxu0 %v312_v50  ;;  %v74_v9 = vld [vmem:[%s580_s1 + $0x1e8] sm:$0xff]  ;;  %v25_v11 = vld [vmem:[%s580_s1 + $0x60] sm:$0xff]  ;;  %v352_v13 = vpack.c.bf16 %v56_v5, %v55_v3  ;;  %v43_v20 = vld [vmem:[%s580_s1 + $0xf0] sm:$0xff] }
  0x13   :  { %345 = vmatpush3.bf16.msra.mxu1 %v344_v51  ;;  %315 = vmatprep.subr.bf16.mxu0 %v314_v52  ;;  %v26_v12 = vld [vmem:[%s580_s1 + $0x68] sm:$0xff]  ;;  %v57_v15 = vld [vmem:[%s580_s1 + $0x160] sm:$0xff]  ;;  %v354_v18 = vpack.c.bf16 %v74_v9, %v73_v8  ;;  %v44_v21 = vld [vmem:[%s580_s1 + $0xf8] sm:$0xff] }
  0x14   :  { %347 = vmatprep.subr.bf16.mxu1 %v346_v56  ;;  %v11_v16 = vld [vmem:[%s581_s0] sm:$0xff]  ;;  %v12_v17 = vld [vmem:[%s581_s0 + $0x8] sm:$0xff]  ;;  %v75_v24 = vld [vmem:[%s580_s1 + $0x1f0] sm:$0xff]  ;;  %v324_v26 = vpack.c.bf16 %v26_v12, %v25_v11  ;;  %v326_v28 = vpack.c.bf16 %v44_v21, %v43_v20 }
  0x15   :  { %v58_v19 = vld [vmem:[%s580_s1 + $0x168] sm:$0xff]  ;;  %v79_v22 = vcombine.high %v11_v16, %v11_v16  ;;  %v80_v23 = vcombine.high %v12_v17, %v12_v17  ;;  %v76_v25 = vld [vmem:[%s580_s1 + $0x1f8] sm:$0xff]  ;;  %v27_v29 = vld [vmem:[%s580_s1 + $0x70] sm:$0xff] }
  0x16   :  { %317 = vmatpush3.bf16.msra.mxu0 %v316_v62  ;;  %v356_v27 = vpack.c.bf16 %v58_v19, %v57_v15  ;;  %v28_v30 = vld [vmem:[%s580_s1 + $0x78] sm:$0xff]  ;;  %v358_v31 = vpack.c.bf16 %v76_v25, %v75_v24  ;;  %v59_v32 = vld [vmem:[%s580_s1 + $0x170] sm:$0xff] }
  0x17   :  { %349 = vmatpush3.bf16.msra.mxu1 %v348_v63  ;;  %319 = vmatprep.subr.bf16.mxu0 %v318_v0  ;;  %v60_v33 = vld [vmem:[%s580_s1 + $0x178] sm:$0xff]  ;;  %v328_v34 = vpack.c.bf16 %v28_v30, %v27_v29 }
  0x18   :  { %351 = vmatprep.subr.bf16.mxu1 %v350_v4  ;;  %147 = vmatprep.mubr.f32.mxu0 %v79_v22  ;;  %v360_v35 = vpack.c.bf16 %v60_v33, %v59_v32 }
  0x19   :  { %217 = vmatprep.mubr.f32.mxu1 %v80_v23 }
  0x1a   :  { %321 = vmatpush3.bf16.msra.mxu0 %v320_v10 }
  0x1b   :  { %353 = vmatpush3.bf16.msra.mxu1 %v352_v13  ;;  %323 = vmatprep.subr.bf16.mxu0 %v322_v14 }
  0x1c   :  { %355 = vmatprep.subr.bf16.mxu1 %v354_v18 }
  0x1e   :  { %325 = vmatpush3.bf16.msra.mxu0 %v324_v26 }
  0x1f   :  { %357 = vmatpush3.bf16.msra.mxu1 %v356_v27  ;;  %327 = vmatprep.subr.bf16.mxu0 %v326_v28 }
  0x20   :  { %359 = vmatprep.subr.bf16.mxu1 %v358_v31 }
  0x22   :  { %329 = vmatpush3.bf16.msra.mxu0 %v328_v34 }
  0x23   :  { %361 = vmatpush3.bf16.msra.mxu1 %v360_v35 }
  0x25   :  { %148 = vmatmul.mubr.f32.vlgmr.msra.gmra.mrb[0].mxu0 %v11_v16 }
  0x26   :  { %218 = vmatmul.mubr.f32.vlgmr.msra.gmra.mrb[0].mxu1 %v12_v17 }
  0xf8   :  { %v260_v36 = vpop.f32.mrb[0].mxu0 }
  0xf9   :  { %v295_v37 = vpop.f32.mrb[0].mxu1  ;;  %v261_v38 = vpop.f32.mrb[1].mxu0 }
  0xfa   :  { %v262_v39 = vadd.f32 %v261_v38, %v260_v36  ;;  %v296_v40 = vpop.f32.mrb[1].mxu1 }
  0xfb   :  { %v297_v41 = vadd.f32 %v296_v40, %v295_v37 }
  0xfd   :  { %v220_v42 = vadd.f32 %v297_v41, %v262_v39 }
  0xff   :  { %223 = vst [vmem:[%s582_s2] sm:$0xf] %v220_v42 }

</bundles_post_ra>
